<compile_context>
chip_gen: v6e
topology: v6e:2x2x1
jax: 0.10.0
libtpu: 0.0.40
codegen_flags: <defaults>
</compile_context>

<pallas_src>
import functools

import jax
import jax.numpy as jnp
from jax.experimental import pallas as pl
from jax.experimental.pallas import tpu as pltpu

LANES = 128
SUBLANE_MULT = 16       # tile-row granularity valid for both f32 and bf16 packing
SMALL_ROWS = 512        # below this: one block, no pipeline bookkeeping
MIN_GRID_STEPS = 4      # keep >=4 steps so v7x can shard the grid across 2 TCs


def _tpu_generation():
    """Best-effort TPU generation (5/6/7/...); 0 if unknown."""
    try:
        kind = jax.devices()[0].device_kind.lower()
        for g in (7, 6, 5, 4, 3, 2):
            if "v%d" % g in kind:
                return g
    except Exception:
        pass
    return 0


def _biased_tanh_kernel(x_ref, o_ref, *, scale_in, scale_out, bias, compute_dtype):
    x = x_ref[...].astype(compute_dtype)
    si = jnp.asarray(scale_in, compute_dtype)
    so = jnp.asarray(scale_out, compute_dtype)
    b = jnp.asarray(bias, compute_dtype)
    y = jnp.tanh(x * si) * so + b
    o_ref[...] = y.astype(o_ref.dtype)


def biased_tanh(x, scale_in=1.0, scale_out=1.0, bias=0.0):
    """Applies tanh(x * scale_in) * scale_out + bias elementwise via Pallas."""
    orig_shape = x.shape
    orig_dtype = x.dtype
    n = x.size
    if n == 0:
        return x

    scale_in = float(scale_in)
    scale_out = float(scale_out)
    bias = float(bias)

    gen = _tpu_generation()
    itemsize = jnp.dtype(orig_dtype).itemsize

    # Per-generation byte-targeted tile budget (keeps every dtype >=85% of
    # the HBM roofline without blowing the scoped VMEM limit).
    if gen >= 7:
        target_tile_bytes = 8 << 20
        vmem_limit_bytes = 48 << 20          # 2 bufs x (in+out) x 8 MiB = 32 MiB
    elif gen == 6:
        target_tile_bytes = 4 << 20
        vmem_limit_bytes = None              # 16 MiB of bufs < 32 MiB default
    else:                                    # v5e or unknown: stay conservative
        target_tile_bytes = 3 << 20
        vmem_limit_bytes = None              # 12 MiB of bufs < 16 MiB default

    # Compute dtype: bf16 stays bf16 on v6e/v7x (bf16 VPU/EUP); otherwise f32.
    if orig_dtype == jnp.bfloat16 and gen >= 6:
        compute_dtype = jnp.bfloat16
    else:
        compute_dtype = jnp.float32

    flat = x.reshape(-1)
    rows = n // LANES
    n_main = rows * LANES

    def _tail_ref(v):
        v32 = v.astype(jnp.float32)
        return (jnp.tanh(v32 * scale_in) * scale_out + bias).astype(orig_dtype)

    if rows == 0:
        # Tiny (<128 elems): not worth a kernel launch.
        return _tail_ref(flat).reshape(orig_shape)

    x2d = flat[:n_main].reshape(rows, LANES)

    # Tile-row selection.
    block_rows = max(
        SUBLANE_MULT,
        (target_tile_bytes // (LANES * itemsize)) // SUBLANE_MULT * SUBLANE_MULT,
    )
    if rows <= SMALL_ROWS:
        tile_rows = rows            # full array as one block (no (8,128) issue)
        grid = (1,)
    else:
        steps = max(MIN_GRID_STEPS, pl.cdiv(rows, block_rows))
        tile_rows = pl.cdiv(rows, steps)
        tile_rows = min(rows, pl.cdiv(tile_rows, SUBLANE_MULT) * SUBLANE_MULT)
        grid = (pl.cdiv(rows, tile_rows),)   # partial edge block is masked

    kernel = functools.partial(
        _biased_tanh_kernel,
        scale_in=scale_in,
        scale_out=scale_out,
        bias=bias,
        compute_dtype=compute_dtype,
    )

    compiler_kwargs = dict(dimension_semantics=("parallel",))
    if vmem_limit_bytes is not None:
        compiler_kwargs["vmem_limit_bytes"] = vmem_limit_bytes

    out2d = pl.pallas_call(
        kernel,
        out_shape=jax.ShapeDtypeStruct((rows, LANES), orig_dtype),
        grid_spec=pltpu.PrefetchScalarGridSpec(
            num_scalar_prefetch=0,
            grid=grid,
            in_specs=[pl.BlockSpec((tile_rows, LANES), lambda i: (i, 0))],
            out_specs=pl.BlockSpec((tile_rows, LANES), lambda i: (i, 0)),
        ),
        compiler_params=pltpu.CompilerParams(**compiler_kwargs),
        cost_estimate=pl.CostEstimate(
            flops=3 * n_main,
            transcendentals=n_main,
            bytes_accessed=2 * n_main * itemsize,
        ),
    )(x2d)

    out_main = out2d.reshape(-1)
    if n_main < n:
        # <128-element tail handled in plain jnp: avoids the pad-concatenate /
        # post-slice passes over the whole tensor that the old version did.
        out_tail = _tail_ref(flat[n_main:])
        out_flat = jnp.concatenate([out_main, out_tail])
    else:
        out_flat = out_main
    return out_flat.reshape(orig_shape)


if __name__ == "__main__":
    key = jax.random.PRNGKey(0)
    # NCHW input like a conv activation: batch=2, channels=4, spatial=16x16.
    x = jax.random.normal(key, (2, 4, 16, 16), dtype=jnp.float32)

    scale_in, scale_out, bias = 2.0, 0.5, 0.1

    out = biased_tanh(x, scale_in=scale_in, scale_out=scale_out, bias=bias)
    out = jax.block_until_ready(out)

    # Reference check in plain JAX (EUP tanh can differ by a few ULP -> 1e-5).
    ref = jnp.tanh(x * scale_in) * scale_out + bias
    assert out.shape == x.shape and out.dtype == x.dtype
    assert jnp.allclose(out, ref, atol=1e-5, rtol=1e-5)

    print("KERNEL_OK")
</pallas_src>

<mosaic_0001>
module attributes {stable_mosaic.version = 11 : i64} {
  func.func @_biased_tanh_kernel(%arg0: i32, %arg1: memref<16x128xf32, #tpu.memory_space<vmem>>, %arg2: memref<16x128xf32, #tpu.memory_space<vmem>>) attributes {dimension_semantics = [#tpu.dimension_semantics<parallel>], iteration_bounds = array<i64: 1>, scalar_prefetch = 0 : i64, scratch_operands = 0 : i64, tpu.core_type = #tpu.core_type<tc>, window_params = [{transform_indices = @transform_0, window_bounds = array<i64: 16, 128>}, {transform_indices = @transform_1, window_bounds = array<i64: 16, 128>}]} {
    %c0 = arith.constant 0 : index
    %c0_0 = arith.constant 0 : index
    %0 = vector.load %arg1[%c0, %c0_0] : memref<16x128xf32, #tpu.memory_space<vmem>>, vector<16x128xf32>
    %cst = arith.constant 2.000000e+00 : f32
    %1 = vector.broadcast %cst : f32 to vector<16x128xf32>
    %2 = arith.mulf %0, %1 : vector<16x128xf32>
    %3 = math.tanh %2 : vector<16x128xf32>
    %cst_1 = arith.constant 5.000000e-01 : f32
    %4 = vector.broadcast %cst_1 : f32 to vector<16x128xf32>
    %5 = arith.mulf %3, %4 : vector<16x128xf32>
    %cst_2 = arith.constant 1.000000e-01 : f32
    %6 = vector.broadcast %cst_2 : f32 to vector<16x128xf32>
    %7 = arith.addf %5, %6 : vector<16x128xf32>
    %c0_3 = arith.constant 0 : index
    %c0_4 = arith.constant 0 : index
    %8 = vector.load %arg2[%c0_3, %c0_4] : memref<16x128xf32, #tpu.memory_space<vmem>>, vector<16x128xf32>
    tpu.vector_store %arg2[%c0_3, %c0_4], %7 {strides = array<i32>} : memref<16x128xf32, #tpu.memory_space<vmem>>, vector<16x128xf32>,
    return
  }
  func.func @transform_0(%arg0: i32) -> (i32, i32) {
    %c0_i32 = arith.constant 0 : i32
    %c0_i32_0 = arith.constant 0 : i32
    return %arg0, %c0_i32 : i32, i32
  }
  func.func @transform_1(%arg0: i32) -> (i32, i32) {
    %c0_i32 = arith.constant 0 : i32
    %c0_i32_0 = arith.constant 0 : i32
    return %arg0, %c0_i32 : i32, i32
  }
}

</mosaic_0001>

<bundles_post_ra>
// kernel: tpu_custom_call.1
= control target key start
LH: loop header
LB: loop body
LE: loop exit
PB: predicated region body
PF: predicated region fallthrough
CT: control target
= control target key end

     0   :  { %6 = vsyncpa [#allocation3], 0  ;;  %s130_s0 = inlined_call_operand.hbm [shape: f32[16,128], index: 0, kind: input, shape index: {}]   ;;  %s131_s1 = inlined_call_operand.hbm [shape: f32[16,128], index: 1, kind: output, shape index: {}]  }
   0x1   :  { %7 = vsyncpa [#allocation4], 0  ;;  %s104_s6 = smov [#allocation2]  }
   0x2   :  { %s13_s7 = sshll.u32 %s104_s6, 4  ;;  %s14_s7 = int_to_ptr.vmem [resolvable:$true] %s13_s7 }
   0x3   :  { %s68_s8 = scalar_lea.vmem %s14_s7, 256  ;;  %p73_p1 = scmp.lt.s32.totalorder %s14_s7, %s14_s7 }
   0x4   :  { %p69_p0 = scmp.ne.s32.totalorder %s14_s7, %s68_s8  ;;  %p74_p2 = scmp.lt.s32.totalorder %s68_s8, %s68_s8 }
   0x6   :  { %p75_p3 = por %p74_p2, %p73_p1 }
   0x8   :  { %p76_p4 = pnand %p75_p3, %p69_p0 }
   0xa   :  { %79 = shalt.err (!%p76_p4)
}
   0xb   :  { %s105_s9 = smov 128   ;;  %s106_s10 = smov 8  }
   0xc   :  { %19 = dma.hbm_to_vmem [thread:$0]  %s130_s0, 256, %s14_s7, [#allocation3], %s105_s9, %s105_s9, %s106_s10  }
   0xd   :  { %100 = dma.done.wait [#allocation3], 256  }
   0xe   :  { %101 = vsyncadd [#allocation3], 4294967040  ;;  %v23_v0 = vld [vmem:[#allocation2] sm:$0xff]  ;;  %v24_v1 = vld [vmem:[#allocation2 + $0x8] sm:$0xff]  ;;  %s107_s13 = smov [#allocation5]  }
   0xf   :  { %v25_v2 = vmul.f32 2.0, %v23_v0  ;;  %v26_v3 = vmul.f32 2.0, %v24_v1  ;;  %s40_s14 = sshll.u32 %s107_s13, 4  ;;  %s41_s14 = int_to_ptr.vmem [resolvable:$true] %s40_s14 }
  0x10   :  { %s80_s0 = scalar_lea.vmem %s41_s14, 256  ;;  %p85_p6 = scmp.lt.s32.totalorder %s41_s14, %s41_s14 }
  0x11   :  { %56 = vtanh.f32 %v25_v2  ;;  %p81_p5 = scmp.ne.s32.totalorder %s41_s14, %s80_s0  ;;  %p86_p7 = scmp.lt.s32.totalorder %s80_s0, %s80_s0 }
  0x12   :  { %58 = vtanh.f32 %v26_v3 }
  0x13   :  { %p87_p8 = por %p86_p7, %p85_p6 }
  0x15   :  { %p88_p9 = pnand %p87_p8, %p81_p5 }
  0x1e   :  { %v57_v4 = vpop.eup %56 }
  0x1f   :  { %v59_v5 = vpop.eup %58  ;;  %v29_v6 = vmul.f32 0.5, %v57_v4 }
  0x20   :  { %v30_v7 = vmul.f32 0.5, %v59_v5 }
  0x21   :  { %v31_v8 = vadd.f32 0.1, %v29_v6 }
  0x22   :  { %v32_v9 = vadd.f32 0.1, %v30_v7 }
  0x23   :  { %33 = vst [vmem:[#allocation5] sm:$0xff] %v31_v8 }
  0x24   :  { %34 = vst [vmem:[#allocation5 + $0x8] sm:$0xff] %v32_v9 }
  0x25   :  { %91 = shalt.err (!%p88_p9)
}
  0x26   :  { %46 = dma.vmem_to_hbm [thread:$0]  %s41_s14, 256, %s131_s1, [#allocation4], %s105_s9, %s105_s9, %s106_s10  }
  0x27   :  { %102 = dma.done.wait [#allocation4], 256  }
  0x28   :  { %103 = vsyncadd [#allocation4], 4294967040 }
  0x29   :  { %50 = vsyncpa [#allocation3], 1 }
  0x2a   :  { %51 = vsyncpa [#allocation4], 1 }

</bundles_post_ra>
